<compile_context>
chip_gen: v7x
topology: tpu7x:2x2x1
jax: 0.10.0
libtpu: 0.0.40
codegen_flags: <defaults>
</compile_context>

<pallas_src>
import jax
import jax.numpy as jnp
from jax.experimental import pallas as pl
from jax.experimental.pallas import tpu as pltpu

LANE = 128
SUBLANE = 8
ROW_ALIGN = 16            # keep row tiles 16-aligned (bf16/f16 inputs pack 16 rows per vreg)
TARGET_ROW_TILE = 4096    # (4096, 128) f32 = 2 MiB per input per step
VMEM_LIMIT_BYTES = 32 * 1024 * 1024
PAD_LOGIT = -1e9          # exp(-|PAD_LOGIT|)==0, PAD_LOGIT*0==-0. -> masked rows contribute 0
EPS = 1e-9


def _cdiv(a, b):
    return -(-a // b)


def _num_tensorcores():
    """Best-effort TensorCore count (2 on v7x, 1 on v5e/v6e). Fallback 2 is correct either
    way: on a 1-TC chip the 'parallel' shard axis is just a 2-iteration serial outer loop."""
    try:
        info = pltpu.get_tpu_info()
        for name in ("num_cores", "num_tensorcores", "tensorcore_count", "cores_per_chip"):
            v = getattr(info, name, None)
            if isinstance(v, int) and v >= 1:
                return max(1, min(int(v), 2))
    except Exception:
        pass
    return 2


def bce_dice_loss(logits, targets, *, eps=EPS, approx_recip=True):
    assert logits.shape == targets.shape, (logits.shape, targets.shape)
    n_elems = logits.size

    x_flat = logits.reshape(-1)
    t_flat = targets.reshape(-1)
    # Stream floating dtypes as-is (kernel upcasts in-register); normalize bool/int masks once.
    if not jnp.issubdtype(x_flat.dtype, jnp.floating):
        x_flat = x_flat.astype(jnp.float32)
    if not jnp.issubdtype(t_flat.dtype, jnp.floating):
        t_flat = t_flat.astype(jnp.float32)

    rows = n_elems // LANE
    tail = n_elems - rows * LANE

    sum_bce = jnp.float32(0.0)
    sum_pt = jnp.float32(0.0)
    sum_un = jnp.float32(0.0)

    if rows > 0:
        main = rows * LANE
        x2 = (x_flat if tail == 0 else x_flat[:main]).reshape(rows, LANE)
        t2 = (t_flat if tail == 0 else t_flat[:main]).reshape(rows, LANE)

        num_shards = _num_tensorcores()
        row_tile = min(TARGET_ROW_TILE, _cdiv(rows, num_shards))
        row_tile = max(ROW_ALIGN, _cdiv(row_tile, ROW_ALIGN) * ROW_ALIGN)
        nblocks = _cdiv(rows, row_tile)
        num_shards = min(num_shards, nblocks)
        steps = _cdiv(nblocks, num_shards)

        def index_map(s, i):
            # Clamp so a shard's trailing "empty" block (possible when nblocks % num_shards
            # != 0) re-reads the last valid block instead of addressing past the array; the
            # in-kernel row mask zeroes its contribution.
            return (jnp.minimum(s * steps + i, nblocks - 1), 0)

        def kernel(x_ref, t_ref, out_ref, bce_acc, pt_acc, un_acc):
            shard = pl.program_id(0)
            step = pl.program_id(1)
            nsteps = pl.num_programs(1)

            @pl.when(step == 0)
            def _():
                bce_acc[...] = jnp.zeros_like(bce_acc)
                pt_acc[...] = jnp.zeros_like(pt_acc)
                un_acc[...] = jnp.zeros_like(un_acc)

            block_row0 = (shard * nsteps + step) * row_tile

            def accumulate(x, t):
                # One exp per element: z = exp(-|x|) feeds both the stable BCE term and sigmoid.
                #   bce     = max(x,0) - x*t + log1p(z)
                #   sigmoid = 1/(1+z) for x>=0, z/(1+z) for x<0
                z = jnp.exp(-jnp.abs(x))
                bce = jnp.maximum(x, 0.0) - x * t + jnp.log1p(z)
                inv = pl.reciprocal(1.0 + z, approx=approx_recip)   # EUP; no VALU refinement
                p = jnp.where(x >= 0.0, inv, z * inv)               # sigmoid w/o a second exp

                # Fold (row_tile,128) -> (8,128) with pure VPU vreg adds — no in-loop XLU
                # cross-lane reductions (kept verbatim per review).
                def fold(v):
                    return jnp.sum(v.reshape(row_tile // SUBLANE, SUBLANE, LANE), axis=0)

                bce_acc[...] += fold(bce)
                pt_acc[...] += fold(p * t)
                un_acc[...] += fold(p + t)

            @pl.when(block_row0 + row_tile <= rows)   # hot path: fully valid block, no mask
            def _():
                accumulate(x_ref[...].astype(jnp.float32), t_ref[...].astype(jnp.float32))

            @pl.when(block_row0 + row_tile > rows)    # at most one ragged/empty block per shard
            def _():
                x = x_ref[...].astype(jnp.float32)
                t = t_ref[...].astype(jnp.float32)
                rid = block_row0 + jax.lax.broadcasted_iota(jnp.int32, (row_tile, LANE), 0)
                valid = rid < rows
                # Substitute (logit=-1e9, target=0) on invalid rows: contributes exactly 0 to
                # all three sums and is immune to garbage in the unspecified OOB block region.
                accumulate(jnp.where(valid, x, PAD_LOGIT), jnp.where(valid, t, 0.0))

            @pl.when(step == nsteps - 1)
            def _():
                out_ref[0, 0, :, :] = bce_acc[...]
                out_ref[0, 1, :, :] = pt_acc[...]
                out_ref[0, 2, :, :] = un_acc[...]

        out_bytes = num_shards * 3 * SUBLANE * LANE * 4
        cost = pl.CostEstimate(
            flops=15 * main,
            transcendentals=3 * main,   # exp, log1p, reciprocal per element
            bytes_accessed=x2.size * x2.dtype.itemsize
                           + t2.size * t2.dtype.itemsize + out_bytes,
        )

        partials = pl.pallas_call(
            kernel,
            out_shape=jax.ShapeDtypeStruct((num_shards, 3, SUBLANE, LANE), jnp.float32),
            grid_spec=pltpu.PrefetchScalarGridSpec(
                num_scalar_prefetch=0,
                grid=(num_shards, steps),
                in_specs=[
                    pl.BlockSpec((row_tile, LANE), index_map),
                    pl.BlockSpec((row_tile, LANE), index_map),
                ],
                out_specs=pl.BlockSpec((1, 3, SUBLANE, LANE), lambda s, i: (s, 0, 0, 0)),
                scratch_shapes=[
                    pltpu.VMEM((SUBLANE, LANE), jnp.float32),  # sum(bce)
                    pltpu.VMEM((SUBLANE, LANE), jnp.float32),  # sum(p*t)
                    pltpu.VMEM((SUBLANE, LANE), jnp.float32),  # sum(p) + sum(t)
                ],
            ),
            compiler_params=pltpu.CompilerParams(
                dimension_semantics=("parallel", "arbitrary"),
                vmem_limit_bytes=VMEM_LIMIT_BYTES,
            ),
            cost_estimate=cost,
        )(x2, t2)

        sums = jnp.sum(partials, axis=(0, 2, 3))      # tiny: num_shards*3*8*128 floats
        sum_bce, sum_pt, sum_un = sums[0], sums[1], sums[2]

    if tail:
        # <128-element remainder: negligible, summed in plain JAX instead of padding the stream.
        xt = x_flat[rows * LANE:].astype(jnp.float32)
        tt = t_flat[rows * LANE:].astype(jnp.float32)
        zt = jnp.exp(-jnp.abs(xt))
        bce_t = jnp.maximum(xt, 0.0) - xt * tt + jnp.log1p(zt)
        pt_ = jnp.where(xt >= 0.0, 1.0 / (1.0 + zt), zt / (1.0 + zt))
        sum_bce = sum_bce + jnp.sum(bce_t)
        sum_pt = sum_pt + jnp.sum(pt_ * tt)
        sum_un = sum_un + jnp.sum(pt_ + tt)

    # TODO(synk): for inputs >~1e8 elements consider per-step partial outputs / pairwise fold;
    # sequential f32 accumulation error can approach 1e-5 relative in that regime.
    bce_loss = sum_bce / jnp.float32(n_elems)
    dice_loss = 1.0 - (2.0 * sum_pt + jnp.float32(eps)) / sum_un
    return bce_loss + dice_loss


def _reference(logits, targets, eps=EPS):
    # Matches the PyTorch spec: global dice over the flattened batch, eps in numerator only,
    # BCEWithLogitsLoss mean over all elements.
    x = logits.astype(jnp.float32)
    t = targets.astype(jnp.float32)
    bce = jnp.mean(jnp.maximum(x, 0.0) - x * t + jnp.log1p(jnp.exp(-jnp.abs(x))))
    p = jax.nn.sigmoid(x)
    inter = 2.0 * jnp.sum(p * t)
    union = jnp.sum(p) + jnp.sum(t)
    dice = 1.0 - (inter + eps) / union
    return bce + dice


if __name__ == "__main__":
    key = jax.random.PRNGKey(0)
    k1, k2 = jax.random.split(key)
    B, C, H, W = 2, 4, 16, 16
    logits = jax.random.normal(k1, (B, C, H, W), dtype=jnp.float32)
    targets = (jax.random.uniform(k2, (B, C, H, W)) > 0.5).astype(jnp.float32)

    loss = jax.block_until_ready(jax.jit(bce_dice_loss)(logits, targets))
    ref = _reference(logits, targets)

    # approx EUP reciprocal (per perf review) bounds the dice term to a few e-5 absolute on the
    # final scalar; 5e-4 tolerance keeps headroom while still catching real bugs.
    # (approx_recip=False recovers <1e-6 agreement at slightly higher VALU cost.)
    assert jnp.allclose(loss, ref, rtol=5e-4, atol=5e-4), (loss, ref)
    print("KERNEL_OK")
</pallas_src>

<mosaic_0001>
module attributes {stable_mosaic.version = 11 : i64} {
  func.func @kernel(%arg0: i32, %arg1: i32, %arg2: memref<16x128xf32, #tpu.memory_space<vmem>>, %arg3: memref<16x128xf32, #tpu.memory_space<vmem>>, %arg4: memref<1x3x8x128xf32, #tpu.memory_space<vmem>>, %arg5: memref<8x128xf32, #tpu.memory_space<vmem>>, %arg6: memref<8x128xf32, #tpu.memory_space<vmem>>, %arg7: memref<8x128xf32, #tpu.memory_space<vmem>>) attributes {dimension_semantics = [#tpu.dimension_semantics<parallel>, #tpu.dimension_semantics<arbitrary>], iteration_bounds = array<i64: 1, 1>, scalar_prefetch = 0 : i64, scratch_operands = 3 : i64, tpu.core_type = #tpu.core_type<tc>, window_params = [{transform_indices = @transform_0, window_bounds = array<i64: 16, 128>}, {transform_indices = @transform_1, window_bounds = array<i64: 16, 128>}, {transform_indices = @transform_2, window_bounds = array<i64: 1, 3, 8, 128>}]} {
    %c0_i32 = arith.constant 0 : i32
    %0 = arith.cmpi eq, %arg1, %c0_i32 : i32
    %1 = arith.extui %0 : i1 to i32
    %c0_i32_0 = arith.constant 0 : i32
    %2 = arith.cmpi ne, %1, %c0_i32_0 : i32
    scf.if %2 {
      %cst = arith.constant 0.000000e+00 : f32
      %17 = vector.broadcast %cst : f32 to vector<8x128xf32>
      %c0 = arith.constant 0 : index
      %c0_9 = arith.constant 0 : index
      %18 = vector.load %arg5[%c0, %c0_9] : memref<8x128xf32, #tpu.memory_space<vmem>>, vector<8x128xf32>
      tpu.vector_store %arg5[%c0, %c0_9], %17 {strides = array<i32>} : memref<8x128xf32, #tpu.memory_space<vmem>>, vector<8x128xf32>,
      %cst_10 = arith.constant 0.000000e+00 : f32
      %19 = vector.broadcast %cst_10 : f32 to vector<8x128xf32>
      %c0_11 = arith.constant 0 : index
      %c0_12 = arith.constant 0 : index
      %20 = vector.load %arg6[%c0_11, %c0_12] : memref<8x128xf32, #tpu.memory_space<vmem>>, vector<8x128xf32>
      tpu.vector_store %arg6[%c0_11, %c0_12], %19 {strides = array<i32>} : memref<8x128xf32, #tpu.memory_space<vmem>>, vector<8x128xf32>,
      %cst_13 = arith.constant 0.000000e+00 : f32
      %21 = vector.broadcast %cst_13 : f32 to vector<8x128xf32>
      %c0_14 = arith.constant 0 : index
      %c0_15 = arith.constant 0 : index
      %22 = vector.load %arg7[%c0_14, %c0_15] : memref<8x128xf32, #tpu.memory_space<vmem>>, vector<8x128xf32>
      tpu.vector_store %arg7[%c0_14, %c0_15], %21 {strides = array<i32>} : memref<8x128xf32, #tpu.memory_space<vmem>>, vector<8x128xf32>,
    } else {
    }
    %c1_i32 = arith.constant 1 : i32
    %3 = arith.muli %arg0, %c1_i32 : i32
    %4 = arith.addi %3, %arg1 : i32
    %c16_i32 = arith.constant 16 : i32
    %5 = arith.muli %4, %c16_i32 : i32
    %c16_i32_1 = arith.constant 16 : i32
    %6 = arith.addi %5, %c16_i32_1 : i32
    %c16_i32_2 = arith.constant 16 : i32
    %7 = arith.cmpi sle, %6, %c16_i32_2 : i32
    %8 = arith.extui %7 : i1 to i32
    %c0_i32_3 = arith.constant 0 : i32
    %9 = arith.cmpi ne, %8, %c0_i32_3 : i32
    scf.if %9 {
      %c0 = arith.constant 0 : index
      %c0_9 = arith.constant 0 : index
      %17 = vector.load %arg2[%c0, %c0_9] : memref<16x128xf32, #tpu.memory_space<vmem>>, vector<16x128xf32>
      %c0_10 = arith.constant 0 : index
      %c0_11 = arith.constant 0 : index
      %18 = vector.load %arg3[%c0_10, %c0_11] : memref<16x128xf32, #tpu.memory_space<vmem>>, vector<16x128xf32>
      %19 = math.absf %17 : vector<16x128xf32>
      %cst = arith.constant 0.000000e+00 : f32
      %20 = vector.broadcast %cst : f32 to vector<16x128xf32>
      %21 = arith.subf %20, %19 : vector<16x128xf32>
      %22 = math.exp %21 : vector<16x128xf32>
      %cst_12 = arith.constant 0.000000e+00 : f32
      %23 = vector.broadcast %cst_12 : f32 to vector<16x128xf32>
      %24 = arith.maximumf %17, %23 : vector<16x128xf32>
      %25 = arith.mulf %17, %18 : vector<16x128xf32>
      %26 = arith.subf %24, %25 : vector<16x128xf32>
      %27 = math.log1p %22 : vector<16x128xf32>
      %28 = arith.addf %26, %27 : vector<16x128xf32>
      %cst_13 = arith.constant 1.000000e+00 : f32
      %29 = vector.broadcast %cst_13 : f32 to vector<16x128xf32>
      %30 = arith.addf %29, %22 : vector<16x128xf32>
      %31 = tpu.reciprocal %30 {approx = true} : vector<16x128xf32> -> vector<16x128xf32>
      %cst_14 = arith.constant 0.000000e+00 : f32
      %32 = vector.broadcast %cst_14 : f32 to vector<16x128xf32>
      %33 = arith.cmpf oge, %17, %32 : vector<16x128xf32>
      %34 = arith.mulf %22, %31 : vector<16x128xf32>
      %35 = arith.select %33, %31, %34 : vector<16x128xi1>, vector<16x128xf32>
      %c0_15 = arith.constant 0 : index
      %c0_16 = arith.constant 0 : index
      %36 = vector.load %arg5[%c0_15, %c0_16] : memref<8x128xf32, #tpu.memory_space<vmem>>, vector<8x128xf32>
      %37 = vector.shape_cast %28 : vector<16x128xf32> to vector<2x8x128xf32>
      %cst_17 = arith.constant dense<0.000000e+00> : vector<8x128xf32>
      %38 = vector.multi_reduction <add>, %37, %cst_17 [0] : vector<2x8x128xf32> to vector<8x128xf32>
      %39 = arith.addf %36, %38 : vector<8x128xf32>
      %c0_18 = arith.constant 0 : index
      %c0_19 = arith.constant 0 : index
      %40 = vector.load %arg5[%c0_18, %c0_19] : memref<8x128xf32, #tpu.memory_space<vmem>>, vector<8x128xf32>
      tpu.vector_store %arg5[%c0_18, %c0_19], %39 {strides = array<i32>} : memref<8x128xf32, #tpu.memory_space<vmem>>, vector<8x128xf32>,
      %c0_20 = arith.constant 0 : index
      %c0_21 = arith.constant 0 : index
      %41 = vector.load %arg6[%c0_20, %c0_21] : memref<8x128xf32, #tpu.memory_space<vmem>>, vector<8x128xf32>
      %42 = arith.mulf %35, %18 : vector<16x128xf32>
      %43 = vector.shape_cast %42 : vector<16x128xf32> to vector<2x8x128xf32>
      %cst_22 = arith.constant dense<0.000000e+00> : vector<8x128xf32>
      %44 = vector.multi_reduction <add>, %43, %cst_22 [0] : vector<2x8x128xf32> to vector<8x128xf32>
      %45 = arith.addf %41, %44 : vector<8x128xf32>
      %c0_23 = arith.constant 0 : index
      %c0_24 = arith.constant 0 : index
      %46 = vector.load %arg6[%c0_23, %c0_24] : memref<8x128xf32, #tpu.memory_space<vmem>>, vector<8x128xf32>
      tpu.vector_store %arg6[%c0_23, %c0_24], %45 {strides = array<i32>} : memref<8x128xf32, #tpu.memory_space<vmem>>, vector<8x128xf32>,
      %c0_25 = arith.constant 0 : index
      %c0_26 = arith.constant 0 : index
      %47 = vector.load %arg7[%c0_25, %c0_26] : memref<8x128xf32, #tpu.memory_space<vmem>>, vector<8x128xf32>
      %48 = arith.addf %35, %18 : vector<16x128xf32>
      %49 = vector.shape_cast %48 : vector<16x128xf32> to vector<2x8x128xf32>
      %cst_27 = arith.constant dense<0.000000e+00> : vector<8x128xf32>
      %50 = vector.multi_reduction <add>, %49, %cst_27 [0] : vector<2x8x128xf32> to vector<8x128xf32>
      %51 = arith.addf %47, %50 : vector<8x128xf32>
      %c0_28 = arith.constant 0 : index
      %c0_29 = arith.constant 0 : index
      %52 = vector.load %arg7[%c0_28, %c0_29] : memref<8x128xf32, #tpu.memory_space<vmem>>, vector<8x128xf32>
      tpu.vector_store %arg7[%c0_28, %c0_29], %51 {strides = array<i32>} : memref<8x128xf32, #tpu.memory_space<vmem>>, vector<8x128xf32>,
    } else {
    }
    %c16_i32_4 = arith.constant 16 : i32
    %10 = arith.addi %5, %c16_i32_4 : i32
    %c16_i32_5 = arith.constant 16 : i32
    %11 = arith.cmpi sgt, %10, %c16_i32_5 : i32
    %12 = arith.extui %11 : i1 to i32
    %c0_i32_6 = arith.constant 0 : i32
    %13 = arith.cmpi ne, %12, %c0_i32_6 : i32
    scf.if %13 {
      %c0 = arith.constant 0 : index
      %c0_9 = arith.constant 0 : index
      %17 = vector.load %arg2[%c0, %c0_9] : memref<16x128xf32, #tpu.memory_space<vmem>>, vector<16x128xf32>
      %c0_10 = arith.constant 0 : index
      %c0_11 = arith.constant 0 : index
      %18 = vector.load %arg3[%c0_10, %c0_11] : memref<16x128xf32, #tpu.memory_space<vmem>>, vector<16x128xf32>
      %19 = tpu.iota {dimensions = array<i32: 0>} : vector<16x128xi32>
      %20 = vector.broadcast %5 : i32 to vector<16x128xi32>
      %21 = arith.addi %20, %19 : vector<16x128xi32>
      %c16_i32_12 = arith.constant 16 : i32
      %22 = vector.broadcast %c16_i32_12 : i32 to vector<16x128xi32>
      %23 = arith.cmpi slt, %21, %22 : vector<16x128xi32>
      %cst = arith.constant -1.000000e+09 : f32
      %24 = vector.broadcast %cst : f32 to vector<16x128xf32>
      %25 = arith.select %23, %17, %24 : vector<16x128xi1>, vector<16x128xf32>
      %cst_13 = arith.constant 0.000000e+00 : f32
      %26 = vector.broadcast %cst_13 : f32 to vector<16x128xf32>
      %27 = arith.select %23, %18, %26 : vector<16x128xi1>, vector<16x128xf32>
      %28 = math.absf %25 : vector<16x128xf32>
      %cst_14 = arith.constant 0.000000e+00 : f32
      %29 = vector.broadcast %cst_14 : f32 to vector<16x128xf32>
      %30 = arith.subf %29, %28 : vector<16x128xf32>
      %31 = math.exp %30 : vector<16x128xf32>
      %cst_15 = arith.constant 0.000000e+00 : f32
      %32 = vector.broadcast %cst_15 : f32 to vector<16x128xf32>
      %33 = arith.maximumf %25, %32 : vector<16x128xf32>
      %34 = arith.mulf %25, %27 : vector<16x128xf32>
      %35 = arith.subf %33, %34 : vector<16x128xf32>
      %36 = math.log1p %31 : vector<16x128xf32>
      %37 = arith.addf %35, %36 : vector<16x128xf32>
      %cst_16 = arith.constant 1.000000e+00 : f32
      %38 = vector.broadcast %cst_16 : f32 to vector<16x128xf32>
      %39 = arith.addf %38, %31 : vector<16x128xf32>
      %40 = tpu.reciprocal %39 {approx = true} : vector<16x128xf32> -> vector<16x128xf32>
      %cst_17 = arith.constant 0.000000e+00 : f32
      %41 = vector.broadcast %cst_17 : f32 to vector<16x128xf32>
      %42 = arith.cmpf oge, %25, %41 : vector<16x128xf32>
      %43 = arith.mulf %31, %40 : vector<16x128xf32>
      %44 = arith.select %42, %40, %43 : vector<16x128xi1>, vector<16x128xf32>
      %c0_18 = arith.constant 0 : index
      %c0_19 = arith.constant 0 : index
      %45 = vector.load %arg5[%c0_18, %c0_19] : memref<8x128xf32, #tpu.memory_space<vmem>>, vector<8x128xf32>
      %46 = vector.shape_cast %37 : vector<16x128xf32> to vector<2x8x128xf32>
      %cst_20 = arith.constant dense<0.000000e+00> : vector<8x128xf32>
      %47 = vector.multi_reduction <add>, %46, %cst_20 [0] : vector<2x8x128xf32> to vector<8x128xf32>
      %48 = arith.addf %45, %47 : vector<8x128xf32>
      %c0_21 = arith.constant 0 : index
      %c0_22 = arith.constant 0 : index
      %49 = vector.load %arg5[%c0_21, %c0_22] : memref<8x128xf32, #tpu.memory_space<vmem>>, vector<8x128xf32>
      tpu.vector_store %arg5[%c0_21, %c0_22], %48 {strides = array<i32>} : memref<8x128xf32, #tpu.memory_space<vmem>>, vector<8x128xf32>,
      %c0_23 = arith.constant 0 : index
      %c0_24 = arith.constant 0 : index
      %50 = vector.load %arg6[%c0_23, %c0_24] : memref<8x128xf32, #tpu.memory_space<vmem>>, vector<8x128xf32>
      %51 = arith.mulf %44, %27 : vector<16x128xf32>
      %52 = vector.shape_cast %51 : vector<16x128xf32> to vector<2x8x128xf32>
      %cst_25 = arith.constant dense<0.000000e+00> : vector<8x128xf32>
      %53 = vector.multi_reduction <add>, %52, %cst_25 [0] : vector<2x8x128xf32> to vector<8x128xf32>
      %54 = arith.addf %50, %53 : vector<8x128xf32>
      %c0_26 = arith.constant 0 : index
      %c0_27 = arith.constant 0 : index
      %55 = vector.load %arg6[%c0_26, %c0_27] : memref<8x128xf32, #tpu.memory_space<vmem>>, vector<8x128xf32>
      tpu.vector_store %arg6[%c0_26, %c0_27], %54 {strides = array<i32>} : memref<8x128xf32, #tpu.memory_space<vmem>>, vector<8x128xf32>,
      %c0_28 = arith.constant 0 : index
      %c0_29 = arith.constant 0 : index
      %56 = vector.load %arg7[%c0_28, %c0_29] : memref<8x128xf32, #tpu.memory_space<vmem>>, vector<8x128xf32>
      %57 = arith.addf %44, %27 : vector<16x128xf32>
      %58 = vector.shape_cast %57 : vector<16x128xf32> to vector<2x8x128xf32>
      %cst_30 = arith.constant dense<0.000000e+00> : vector<8x128xf32>
      %59 = vector.multi_reduction <add>, %58, %cst_30 [0] : vector<2x8x128xf32> to vector<8x128xf32>
      %60 = arith.addf %56, %59 : vector<8x128xf32>
      %c0_31 = arith.constant 0 : index
      %c0_32 = arith.constant 0 : index
      %61 = vector.load %arg7[%c0_31, %c0_32] : memref<8x128xf32, #tpu.memory_space<vmem>>, vector<8x128xf32>
      tpu.vector_store %arg7[%c0_31, %c0_32], %60 {strides = array<i32>} : memref<8x128xf32, #tpu.memory_space<vmem>>, vector<8x128xf32>,
    } else {
    }
    %c0_i32_7 = arith.constant 0 : i32
    %14 = arith.cmpi eq, %arg1, %c0_i32_7 : i32
    %15 = arith.extui %14 : i1 to i32
    %c0_i32_8 = arith.constant 0 : i32
    %16 = arith.cmpi ne, %15, %c0_i32_8 : i32
    scf.if %16 {
      %c0 = arith.constant 0 : index
      %c0_9 = arith.constant 0 : index
      %17 = vector.load %arg5[%c0, %c0_9] : memref<8x128xf32, #tpu.memory_space<vmem>>, vector<8x128xf32>
      %c0_10 = arith.constant 0 : index
      %c0_11 = arith.constant 0 : index
      %c0_12 = arith.constant 0 : index
      %c0_13 = arith.constant 0 : index
      %18 = vector.load %arg4[%c0_10, %c0_11, %c0_12, %c0_13] : memref<1x3x8x128xf32, #tpu.memory_space<vmem>>, vector<1x1x8x128xf32>
      %19 = vector.shape_cast %18 : vector<1x1x8x128xf32> to vector<8x128xf32>
      %20 = vector.shape_cast %17 : vector<8x128xf32> to vector<1x1x8x128xf32>
      tpu.vector_store %arg4[%c0_10, %c0_11, %c0_12, %c0_13], %20 {strides = array<i32>} : memref<1x3x8x128xf32, #tpu.memory_space<vmem>>, vector<1x1x8x128xf32>,
      %c0_14 = arith.constant 0 : index
      %c0_15 = arith.constant 0 : index
      %21 = vector.load %arg6[%c0_14, %c0_15] : memref<8x128xf32, #tpu.memory_space<vmem>>, vector<8x128xf32>
      %c0_16 = arith.constant 0 : index
      %c1 = arith.constant 1 : index
      %c0_17 = arith.constant 0 : index
      %c0_18 = arith.constant 0 : index
      %22 = vector.load %arg4[%c0_16, %c1, %c0_17, %c0_18] : memref<1x3x8x128xf32, #tpu.memory_space<vmem>>, vector<1x1x8x128xf32>
      %23 = vector.shape_cast %22 : vector<1x1x8x128xf32> to vector<8x128xf32>
      %24 = vector.shape_cast %21 : vector<8x128xf32> to vector<1x1x8x128xf32>
      tpu.vector_store %arg4[%c0_16, %c1, %c0_17, %c0_18], %24 {strides = array<i32>} : memref<1x3x8x128xf32, #tpu.memory_space<vmem>>, vector<1x1x8x128xf32>,
      %c0_19 = arith.constant 0 : index
      %c0_20 = arith.constant 0 : index
      %25 = vector.load %arg7[%c0_19, %c0_20] : memref<8x128xf32, #tpu.memory_space<vmem>>, vector<8x128xf32>
      %c0_21 = arith.constant 0 : index
      %c2 = arith.constant 2 : index
      %c0_22 = arith.constant 0 : index
      %c0_23 = arith.constant 0 : index
      %26 = vector.load %arg4[%c0_21, %c2, %c0_22, %c0_23] : memref<1x3x8x128xf32, #tpu.memory_space<vmem>>, vector<1x1x8x128xf32>
      %27 = vector.shape_cast %26 : vector<1x1x8x128xf32> to vector<8x128xf32>
      %28 = vector.shape_cast %25 : vector<8x128xf32> to vector<1x1x8x128xf32>
      tpu.vector_store %arg4[%c0_21, %c2, %c0_22, %c0_23], %28 {strides = array<i32>} : memref<1x3x8x128xf32, #tpu.memory_space<vmem>>, vector<1x1x8x128xf32>,
    } else {
    }
    return
  }
  func.func @transform_0(%arg0: i32, %arg1: i32) -> (i32, i32) {
    %c1_i32 = arith.constant 1 : i32
    %0 = arith.muli %arg0, %c1_i32 : i32
    %1 = arith.addi %0, %arg1 : i32
    %c0_i32 = arith.constant 0 : i32
    %2 = arith.minsi %1, %c0_i32 : i32
    %c0_i32_0 = arith.constant 0 : i32
    %c0_i32_1 = arith.constant 0 : i32
    return %2, %c0_i32_0 : i32, i32
  }
  func.func @transform_1(%arg0: i32, %arg1: i32) -> (i32, i32) {
    %c1_i32 = arith.constant 1 : i32
    %0 = arith.muli %arg0, %c1_i32 : i32
    %1 = arith.addi %0, %arg1 : i32
    %c0_i32 = arith.constant 0 : i32
    %2 = arith.minsi %1, %c0_i32 : i32
    %c0_i32_0 = arith.constant 0 : i32
    %c0_i32_1 = arith.constant 0 : i32
    return %2, %c0_i32_0 : i32, i32
  }
  func.func @transform_2(%arg0: i32, %arg1: i32) -> (i32, i32, i32, i32) {
    %c0_i32 = arith.constant 0 : i32
    %c0_i32_0 = arith.constant 0 : i32
    %c0_i32_1 = arith.constant 0 : i32
    %c0_i32_2 = arith.constant 0 : i32
    return %arg0, %c0_i32, %c0_i32_0, %c0_i32_1 : i32, i32, i32, i32
  }
}

</mosaic_0001>

<bundles_post_ra>
// kernel: bce_dice_loss.1
= control target key start
LH: loop header
LB: loop body
LE: loop exit
PB: predicated region body
PF: predicated region fallthrough
CT: control target
= control target key end

     0   :  { %s310_s0 = inlined_call_operand.vmem [shape: f32[16,128], index: 0, kind: input, shape index: {}]   ;;  %s311_s1 = inlined_call_operand.vmem [shape: f32[16,128], index: 1, kind: input, shape index: {}]   ;;  %s312_s2 = inlined_call_operand.vmem [shape: f32[1,3,8,128], index: 2, kind: output, shape index: {}]  }
   0x1   :  { %v89_v0 = vld [vmem:[%s310_s0] sm:$0xff]  ;;  %v90_v1 = vld [vmem:[%s310_s0 + $0x8] sm:$0xff] }
   0x2   :  { %v93_v2 = vand.u32 2147483647, %v89_v0  ;;  %v94_v3 = vand.u32 2147483647, %v90_v1  ;;  %v91_v14 = vld [vmem:[%s311_s1] sm:$0xff]  ;;  %v92_v15 = vld [vmem:[%s311_s1 + $0x8] sm:$0xff] }
   0x3   :  { %v101_v17 = vmax.f32 %v89_v0, 0.0  ;;  %v103_v18 = vmul.f32 %v91_v14, %v89_v0  ;;  %v102_v21 = vmax.f32 %v90_v1, 0.0  ;;  %v104_v22 = vmul.f32 %v92_v15, %v90_v1 }
   0x4   :  { %v95_v4 = vsub.f32 0.0, %v93_v2  ;;  %v96_v5 = vsub.f32 0.0, %v94_v3  ;;  %vm131_vm2 = vcmp.ge.f32.partialorder %v89_v0, 0.0  ;;  %vm132_vm3 = vcmp.ge.f32.partialorder %v90_v1, 0.0 }
   0x5   :  { %v105_v26 = vsub.f32 %v101_v17, %v103_v18  ;;  %v106_v29 = vsub.f32 %v102_v21, %v104_v22 }
   0x6   :  { %v97_v6 = vmul.f32 1.442695, %v95_v4  ;;  %v99_v7 = vmul.f32 1.442695, %v96_v5 }
   0x8   :  { %262 = vpow2.f32 %v97_v6 }
   0x9   :  { %264 = vpow2.f32 %v99_v7 }
  0x12   :  { %v263_v8 = vpop.eup %262 }
  0x13   :  { %v265_v9 = vpop.eup %264  ;;  %v107_v10 = vadd.f32 1.0, %v263_v8  ;;  %v110_v12 = vmul.f32 -0.5, %v263_v8  ;;  %v113_v19 = vand.u32 2147483647, %v263_v8 }
  0x14   :  { %v116_v11 = vadd.f32 1.0, %v265_v9  ;;  %v119_v13 = vmul.f32 -0.5, %v265_v9  ;;  %v122_v23 = vand.u32 2147483647, %v265_v9 }
  0x15   :  { %266 = vlog2.f32 %v107_v10  ;;  %v111_v16 = vadd.f32 1.0, %v110_v12  ;;  %vm114_vm0 = vcmp.lt.f32.partialorder %v113_v19, 0.0004427343 }
  0x16   :  { %268 = vlog2.f32 %v116_v11  ;;  %v120_v20 = vadd.f32 1.0, %v119_v13  ;;  %vm123_vm1 = vcmp.lt.f32.partialorder %v122_v23, 0.0004427343 }
  0x17   :  { %270 = vrcp.f32 %v107_v10  ;;  %v112_v24 = vmul.f32 %v263_v8, %v111_v16 }
  0x18   :  { %272 = vrcp.f32 %v116_v11  ;;  %v121_v27 = vmul.f32 %v265_v9, %v120_v20 }
  0x1f   :  { %v267_v25 = vpop.eup %266 }
  0x20   :  { %v269_v28 = vpop.eup %268  ;;  %v109_v30 = vmul.f32 0.6931472, %v267_v25 }
  0x21   :  { %v271_v31 = vpop.eup %270  ;;  %v118_v32 = vmul.f32 0.6931472, %v269_v28 }
  0x22   :  { %v273_v33 = vpop.eup %272  ;;  %v115_v34 = vsel %vm114_vm0, %v112_v24, %v109_v30  ;;  %v133_v35 = vmul.f32 %v271_v31, %v263_v8 }
  0x23   :  { %v124_v36 = vsel %vm123_vm1, %v121_v27, %v118_v32  ;;  %v125_v37 = vadd.f32 %v115_v34, %v105_v26  ;;  %v134_v38 = vmul.f32 %v273_v33, %v265_v9 }
  0x24   :  { %v126_v39 = vadd.f32 %v124_v36, %v106_v29  ;;  %v135_v40 = vsel %vm131_vm2, %v271_v31, %v133_v35 }
  0x25   :  { %v136_v41 = vsel %vm132_vm3, %v273_v33, %v134_v38  ;;  %v142_v42 = vmul.f32 %v135_v40, %v91_v14  ;;  %v148_v43 = vadd.f32 %v135_v40, %v91_v14 }
  0x26   :  { %v138_v44 = vadd.f32 %v126_v39, %v125_v37  ;;  %v143_v45 = vmul.f32 %v136_v41, %v92_v15  ;;  %v149_v46 = vadd.f32 %v136_v41, %v92_v15 }
  0x28   :  { %237 = vst [vmem:[%s312_s2] sm:$0xff] %v138_v44  ;;  %v144_v47 = vadd.f32 %v143_v45, %v142_v42  ;;  %v150_v48 = vadd.f32 %v149_v46, %v148_v43 }
  0x2a   :  { %260 = vst [vmem:[%s312_s2 + $0x8] sm:$0xff] %v144_v47  ;;  %261 = vst [vmem:[%s312_s2 + $0x10] sm:$0xff] %v150_v48 }

</bundles_post_ra>
